<compile_context>
chip_gen: v7x
topology: tpu7x:2x2x1
jax: 0.10.0
libtpu: 0.0.40
codegen_flags: <defaults>
</compile_context>

<pallas_src>
import jax
import jax.numpy as jnp
from jax.experimental import pallas as pl
from jax.experimental.pallas import tpu as pltpu


def ode_func_kernel(y_ref, h_ref, e_ref, w1y_ref, w1h_ref, b1_ref,
                    w2_ref, w2t_ref, b2_ref, o_ref):
    y = y_ref[...]            # (TM, D)
    h = h_ref[...]            # (TM, H)
    e = e_ref[...]            # (TM, D)
    w1y = w1y_ref[...]        # (D, Hid)   rows of W1 belonging to y
    w1h = w1h_ref[...]        # (H, Hid)   rows of W1 belonging to h
    b1 = b1_ref[...]          # (1, Hid)   already includes t * W1[0:1, :]
    w2 = w2_ref[...]          # (Hid, D)
    w2t = w2t_ref[...]        # (D, Hid)   = W2^T, pre-transposed in wrapper
    b2 = b2_ref[...]          # (1, D)

    # ---- diffeq forward: dy = tanh([t|y|h] @ W1 + b1) @ W2 + b2 ----
    h1 = (jnp.dot(y, w1y, preferred_element_type=jnp.float32)
          + jnp.dot(h, w1h, preferred_element_type=jnp.float32)
          + b1)
    a1 = jnp.tanh(h1)
    dy = jnp.dot(a1, w2, preferred_element_type=jnp.float32) + b2

    # ---- analytic VJP w.r.t. y with cotangent e (Hutchinson estimator) ----
    # g_y . e == rowsum(g_h1 * (e @ W1_y))  (no (TM, Din) matmul, no slice)
    g_a1 = jnp.dot(e, w2t, preferred_element_type=jnp.float32)   # (TM, Hid)
    g_h1 = g_a1 * (1.0 - a1 * a1)                                # tanh'
    e_w1y = jnp.dot(e, w1y, preferred_element_type=jnp.float32)  # (TM, Hid)
    div = jnp.sum(g_h1 * e_w1y, axis=-1, keepdims=True)          # (TM, 1)

    # single merged output block: [dy | -div]
    out = jnp.concatenate([dy, -div], axis=-1)                   # (TM, D+1)
    o_ref[...] = out.astype(o_ref.dtype)


def ode_func_forward(t, states, e, params, *, tm=512):
    """ODEfunc.forward.  states = (y, logp, history_embedding)."""
    y, _logp, h = states
    lead_shape = y.shape[:-1]
    D = y.shape[-1]
    H = h.shape[-1]
    N = 1
    for s in lead_shape:
        N *= s

    w1, b1, w2, b2 = params
    Hid = w1.shape[-1]

    # ---- one-time, constant-shaped XLA prep (outside the kernel) ----
    # split W1 and fold the time column into the bias (removes the concat)
    b1_eff = b1 + jnp.asarray(t, dtype=w1.dtype) * w1[0:1, :]    # (1, Hid)
    w1y = w1[1:1 + D, :]                                         # (D, Hid)
    w1h = w1[1 + D:, :]                                          # (H, Hid)
    w2t = w2.T                                                   # (D, Hid)

    y2 = y.reshape(N, D)
    h2 = h.reshape(N, H)
    e2 = e.reshape(N, D)

    # ---- tiling: big row tiles, multiple of 8, padded grid (no dropped rows)
    tm = max(8, min(int(tm), ((N + 7) // 8) * 8))
    tm = ((tm + 7) // 8) * 8
    n_blocks = pl.cdiv(N, tm)
    n_pad = n_blocks * tm
    if n_pad != N:
        pad = n_pad - N
        y2 = jnp.pad(y2, ((0, pad), (0, 0)))
        h2 = jnp.pad(h2, ((0, pad), (0, 0)))
        e2 = jnp.pad(e2, ((0, pad), (0, 0)))

    row_map = lambda i: (i, 0)
    full_map = lambda i: (0, 0)

    out = pl.pallas_call(
        ode_func_kernel,
        out_shape=jax.ShapeDtypeStruct((n_pad, D + 1), y.dtype),
        grid_spec=pltpu.PrefetchScalarGridSpec(
            num_scalar_prefetch=0,
            grid=(n_blocks,),
            in_specs=[
                pl.BlockSpec((tm, D), row_map),      # y
                pl.BlockSpec((tm, H), row_map),      # h
                pl.BlockSpec((tm, D), row_map),      # e
                pl.BlockSpec((D, Hid), full_map),    # W1_y
                pl.BlockSpec((H, Hid), full_map),    # W1_h
                pl.BlockSpec((1, Hid), full_map),    # b1_eff
                pl.BlockSpec((Hid, D), full_map),    # W2
                pl.BlockSpec((D, Hid), full_map),    # W2^T
                pl.BlockSpec((1, D), full_map),      # b2
            ],
            out_specs=pl.BlockSpec((tm, D + 1), row_map),
        ),
        compiler_params=pltpu.CompilerParams(
            dimension_semantics=("parallel",)),
    )(y2, h2, e2, w1y, w1h, b1_eff, w2, w2t, b2)

    out = out[:N]
    dy = out[:, :D].reshape(*lead_shape, D)
    neg_div = out[:, D:].reshape(*lead_shape, 1)
    return dy, neg_div, jnp.zeros_like(h)


# ---------------------------- pure-JAX reference ----------------------------
def _diffeq_ref(t, y, h, params):
    w1, b1, w2, b2 = params
    t_col = jnp.full(y.shape[:-1] + (1,), t, dtype=y.dtype)
    x = jnp.concatenate([t_col, y, h], axis=-1)
    return jnp.tanh(x @ w1 + b1) @ w2 + b2


def _ref_forward(t, states, e, params):
    y, _logp, h = states
    f = lambda yy: _diffeq_ref(t, yy, h, params)
    dy, vjp_fn = jax.vjp(f, y)
    (g_y,) = vjp_fn(e)                    # e^T (d dy / d y)
    div = jnp.sum(g_y * e, axis=-1, keepdims=True)
    return dy, -div, jnp.zeros_like(h)


if __name__ == "__main__":
    B, S, D, H, HID = 2, 8, 4, 32, 32
    key = jax.random.PRNGKey(0)
    k_y, k_h, k_e, k_lp, kw1, kb1, kw2, kb2 = jax.random.split(key, 8)

    y = jax.random.normal(k_y, (B, S, D), dtype=jnp.float32)
    logp = jax.random.normal(k_lp, (B, S, 1), dtype=jnp.float32)
    h = jax.random.normal(k_h, (B, S, H), dtype=jnp.float32)
    e = jax.random.normal(k_e, (B, S, D), dtype=jnp.float32)   # ODEfunc._e
    t = jnp.float32(0.5)

    Din = 1 + D + H
    w1 = jax.random.normal(kw1, (Din, HID), dtype=jnp.float32) * 0.1
    b1 = jax.random.normal(kb1, (1, HID), dtype=jnp.float32) * 0.1
    w2 = jax.random.normal(kw2, (HID, D), dtype=jnp.float32) * 0.1
    b2 = jax.random.normal(kb2, (1, D), dtype=jnp.float32) * 0.1
    params = (w1, b1, w2, b2)

    states = (y, logp, h)
    dy, neg_div, zeros_h = jax.block_until_ready(
        ode_func_forward(t, states, e, params))

    dy_ref, neg_div_ref, zeros_h_ref = _ref_forward(t, states, e, params)

    assert dy.shape == (B, S, D)
    assert neg_div.shape == (B, S, 1)
    assert zeros_h.shape == (B, S, H)
    assert jnp.allclose(dy, dy_ref, atol=1e-5, rtol=1e-5)
    assert jnp.allclose(neg_div, neg_div_ref, atol=1e-5, rtol=1e-5)
    assert jnp.allclose(zeros_h, zeros_h_ref)

    print("KERNEL_OK")
</pallas_src>

<mosaic_0001>
module attributes {stable_mosaic.version = 11 : i64} {
  func.func @ode_func_kernel(%arg0: i32, %arg1: memref<16x4xf32, #tpu.memory_space<vmem>>, %arg2: memref<16x32xf32, #tpu.memory_space<vmem>>, %arg3: memref<16x4xf32, #tpu.memory_space<vmem>>, %arg4: memref<4x32xf32, #tpu.memory_space<vmem>>, %arg5: memref<32x32xf32, #tpu.memory_space<vmem>>, %arg6: memref<1x32xf32, #tpu.memory_space<vmem>>, %arg7: memref<32x4xf32, #tpu.memory_space<vmem>>, %arg8: memref<4x32xf32, #tpu.memory_space<vmem>>, %arg9: memref<1x4xf32, #tpu.memory_space<vmem>>, %arg10: memref<16x5xf32, #tpu.memory_space<vmem>>) attributes {dimension_semantics = [#tpu.dimension_semantics<parallel>], iteration_bounds = array<i64: 1>, scalar_prefetch = 0 : i64, scratch_operands = 0 : i64, tpu.core_type = #tpu.core_type<tc>, window_params = [{transform_indices = @transform_0, window_bounds = array<i64: 16, 4>}, {transform_indices = @transform_1, window_bounds = array<i64: 16, 32>}, {transform_indices = @transform_2, window_bounds = array<i64: 16, 4>}, {pipeline_mode = #tpu.pipeline_mode<synchronous>, transform_indices = @transform_3, window_bounds = array<i64: 4, 32>}, {pipeline_mode = #tpu.pipeline_mode<synchronous>, transform_indices = @transform_4, window_bounds = array<i64: 32, 32>}, {pipeline_mode = #tpu.pipeline_mode<synchronous>, transform_indices = @transform_5, window_bounds = array<i64: 1, 32>}, {pipeline_mode = #tpu.pipeline_mode<synchronous>, transform_indices = @transform_6, window_bounds = array<i64: 32, 4>}, {pipeline_mode = #tpu.pipeline_mode<synchronous>, transform_indices = @transform_7, window_bounds = array<i64: 4, 32>}, {pipeline_mode = #tpu.pipeline_mode<synchronous>, transform_indices = @transform_8, window_bounds = array<i64: 1, 4>}, {transform_indices = @transform_9, window_bounds = array<i64: 16, 5>}]} {
    %c0 = arith.constant 0 : index
    %c0_0 = arith.constant 0 : index
    %0 = vector.load %arg1[%c0, %c0_0] : memref<16x4xf32, #tpu.memory_space<vmem>>, vector<16x4xf32>
    %c0_1 = arith.constant 0 : index
    %c0_2 = arith.constant 0 : index
    %1 = vector.load %arg2[%c0_1, %c0_2] : memref<16x32xf32, #tpu.memory_space<vmem>>, vector<16x32xf32>
    %c0_3 = arith.constant 0 : index
    %c0_4 = arith.constant 0 : index
    %2 = vector.load %arg3[%c0_3, %c0_4] : memref<16x4xf32, #tpu.memory_space<vmem>>, vector<16x4xf32>
    %c0_5 = arith.constant 0 : index
    %c0_6 = arith.constant 0 : index
    %3 = vector.load %arg4[%c0_5, %c0_6] : memref<4x32xf32, #tpu.memory_space<vmem>>, vector<4x32xf32>
    %c0_7 = arith.constant 0 : index
    %c0_8 = arith.constant 0 : index
    %4 = vector.load %arg5[%c0_7, %c0_8] : memref<32x32xf32, #tpu.memory_space<vmem>>, vector<32x32xf32>
    %c0_9 = arith.constant 0 : index
    %c0_10 = arith.constant 0 : index
    %5 = vector.load %arg6[%c0_9, %c0_10] : memref<1x32xf32, #tpu.memory_space<vmem>>, vector<1x32xf32>
    %c0_11 = arith.constant 0 : index
    %c0_12 = arith.constant 0 : index
    %6 = vector.load %arg7[%c0_11, %c0_12] : memref<32x4xf32, #tpu.memory_space<vmem>>, vector<32x4xf32>
    %c0_13 = arith.constant 0 : index
    %c0_14 = arith.constant 0 : index
    %7 = vector.load %arg8[%c0_13, %c0_14] : memref<4x32xf32, #tpu.memory_space<vmem>>, vector<4x32xf32>
    %c0_15 = arith.constant 0 : index
    %c0_16 = arith.constant 0 : index
    %8 = vector.load %arg9[%c0_15, %c0_16] : memref<1x4xf32, #tpu.memory_space<vmem>>, vector<1x4xf32>
    %cst = arith.constant dense<0.000000e+00> : vector<16x32xf32>
    %9 = tpu.matmul %0, %3, %cst {dimension_numbers = #tpu.dot_dimension_numbers<[1], [0], [0], [1], [0, 0, 1, 1], [], []>} : vector<16x4xf32>, vector<4x32xf32>, vector<16x32xf32> -> vector<16x32xf32>
    %cst_17 = arith.constant dense<0.000000e+00> : vector<16x32xf32>
    %10 = tpu.matmul %1, %4, %cst_17 {dimension_numbers = #tpu.dot_dimension_numbers<[1], [0], [0], [1], [0, 0, 1, 1], [], []>} : vector<16x32xf32>, vector<32x32xf32>, vector<16x32xf32> -> vector<16x32xf32>
    %11 = arith.addf %9, %10 : vector<16x32xf32>
    %12 = vector.broadcast %5 : vector<1x32xf32> to vector<16x32xf32>
    %13 = arith.addf %11, %12 : vector<16x32xf32>
    %14 = math.tanh %13 : vector<16x32xf32>
    %cst_18 = arith.constant dense<0.000000e+00> : vector<16x4xf32>
    %15 = tpu.matmul %14, %6, %cst_18 {dimension_numbers = #tpu.dot_dimension_numbers<[1], [0], [0], [1], [0, 0, 1, 1], [], []>} : vector<16x32xf32>, vector<32x4xf32>, vector<16x4xf32> -> vector<16x4xf32>
    %16 = vector.broadcast %8 : vector<1x4xf32> to vector<16x4xf32>
    %17 = arith.addf %15, %16 : vector<16x4xf32>
    %cst_19 = arith.constant dense<0.000000e+00> : vector<16x32xf32>
    %18 = tpu.matmul %2, %7, %cst_19 {dimension_numbers = #tpu.dot_dimension_numbers<[1], [0], [0], [1], [0, 0, 1, 1], [], []>} : vector<16x4xf32>, vector<4x32xf32>, vector<16x32xf32> -> vector<16x32xf32>
    %19 = arith.mulf %14, %14 : vector<16x32xf32>
    %cst_20 = arith.constant 1.000000e+00 : f32
    %20 = vector.broadcast %cst_20 : f32 to vector<16x32xf32>
    %21 = arith.subf %20, %19 : vector<16x32xf32>
    %22 = arith.mulf %18, %21 : vector<16x32xf32>
    %cst_21 = arith.constant dense<0.000000e+00> : vector<16x32xf32>
    %23 = tpu.matmul %2, %3, %cst_21 {dimension_numbers = #tpu.dot_dimension_numbers<[1], [0], [0], [1], [0, 0, 1, 1], [], []>} : vector<16x4xf32>, vector<4x32xf32>, vector<16x32xf32> -> vector<16x32xf32>
    %24 = arith.mulf %22, %23 : vector<16x32xf32>
    %cst_22 = arith.constant dense<0.000000e+00> : vector<16xf32>
    %25 = vector.multi_reduction <add>, %24, %cst_22 [1] : vector<16x32xf32> to vector<16xf32>
    %26 = vector.shape_cast %25 : vector<16xf32> to vector<16x1xf32>
    %cst_23 = arith.constant 0.000000e+00 : f32
    %27 = vector.broadcast %cst_23 : f32 to vector<16x1xf32>
    %28 = arith.subf %27, %26 : vector<16x1xf32>
    %29 = tpu.concatenate %17, %28 in 1 : vector<16x4xf32>, vector<16x1xf32> -> vector<16x5xf32>
    %c0_24 = arith.constant 0 : index
    %c0_25 = arith.constant 0 : index
    %30 = vector.load %arg10[%c0_24, %c0_25] : memref<16x5xf32, #tpu.memory_space<vmem>>, vector<16x5xf32>
    tpu.vector_store %arg10[%c0_24, %c0_25], %29 {strides = array<i32>} : memref<16x5xf32, #tpu.memory_space<vmem>>, vector<16x5xf32>,
    return
  }
  func.func @transform_0(%arg0: i32) -> (i32, i32) {
    %c0_i32 = arith.constant 0 : i32
    %c0_i32_0 = arith.constant 0 : i32
    return %arg0, %c0_i32 : i32, i32
  }
  func.func @transform_1(%arg0: i32) -> (i32, i32) {
    %c0_i32 = arith.constant 0 : i32
    %c0_i32_0 = arith.constant 0 : i32
    return %arg0, %c0_i32 : i32, i32
  }
  func.func @transform_2(%arg0: i32) -> (i32, i32) {
    %c0_i32 = arith.constant 0 : i32
    %c0_i32_0 = arith.constant 0 : i32
    return %arg0, %c0_i32 : i32, i32
  }
  func.func @transform_3(%arg0: i32) -> (i32, i32) {
    %c0_i32 = arith.constant 0 : i32
    %c0_i32_0 = arith.constant 0 : i32
    %c0_i32_1 = arith.constant 0 : i32
    return %c0_i32, %c0_i32_0 : i32, i32
  }
  func.func @transform_4(%arg0: i32) -> (i32, i32) {
    %c0_i32 = arith.constant 0 : i32
    %c0_i32_0 = arith.constant 0 : i32
    %c0_i32_1 = arith.constant 0 : i32
    return %c0_i32, %c0_i32_0 : i32, i32
  }
  func.func @transform_5(%arg0: i32) -> (i32, i32) {
    %c0_i32 = arith.constant 0 : i32
    %c0_i32_0 = arith.constant 0 : i32
    %c0_i32_1 = arith.constant 0 : i32
    return %c0_i32, %c0_i32_0 : i32, i32
  }
  func.func @transform_6(%arg0: i32) -> (i32, i32) {
    %c0_i32 = arith.constant 0 : i32
    %c0_i32_0 = arith.constant 0 : i32
    %c0_i32_1 = arith.constant 0 : i32
    return %c0_i32, %c0_i32_0 : i32, i32
  }
  func.func @transform_7(%arg0: i32) -> (i32, i32) {
    %c0_i32 = arith.constant 0 : i32
    %c0_i32_0 = arith.constant 0 : i32
    %c0_i32_1 = arith.constant 0 : i32
    return %c0_i32, %c0_i32_0 : i32, i32
  }
  func.func @transform_8(%arg0: i32) -> (i32, i32) {
    %c0_i32 = arith.constant 0 : i32
    %c0_i32_0 = arith.constant 0 : i32
    %c0_i32_1 = arith.constant 0 : i32
    return %c0_i32, %c0_i32_0 : i32, i32
  }
  func.func @transform_9(%arg0: i32) -> (i32, i32) {
    %c0_i32 = arith.constant 0 : i32
    %c0_i32_0 = arith.constant 0 : i32
    return %arg0, %c0_i32 : i32, i32
  }
}

</mosaic_0001>

<bundles_post_ra>
// kernel: tpu_custom_call.1
= control target key start
LH: loop header
LB: loop body
LE: loop exit
PB: predicated region body
PF: predicated region fallthrough
CT: control target
= control target key end

     0   :  { %vm139_vm0 = vcmask 1043456   ;;  %vm132_vm1 = vcmask 31744   ;;  %vm50_vm2 = vcmask 261120   ;;  %vm492_vm3 = vcmask 39936   ;;  %s724_s4 = inlined_call_operand.vmem [shape: f32[32,32], index: 4, kind: input, shape index: {}]   ;;  %s725_s3 = inlined_call_operand.vmem [shape: f32[4,32], index: 3, kind: input, shape index: {}]   ;;  %s726_s0 = inlined_call_operand.vmem [shape: f32[16,4], index: 0, kind: input, shape index: {}]   ;;  %s727_s1 = inlined_call_operand.vmem [shape: f32[16,32], index: 1, kind: input, shape index: {}]   ;;  %s728_s6 = inlined_call_operand.vmem [shape: f32[32,4], index: 6, kind: input, shape index: {}]   ;;  %s729_s7 = inlined_call_operand.vmem [shape: f32[4,32], index: 7, kind: input, shape index: {}]   ;;  %s730_s2 = inlined_call_operand.vmem [shape: f32[16,4], index: 2, kind: input, shape index: {}]   ;;  %s731_s5 = inlined_call_operand.vmem [shape: f32[1,32], index: 5, kind: input, shape index: {}]   ;;  %s732_s8 = inlined_call_operand.vmem [shape: f32[1,4], index: 8, kind: input, shape index: {}]   ;;  %s733_s9 = inlined_call_operand.vmem [shape: f32[16,5], index: 9, kind: output, shape index: {}]  }
   0x1   :  { %v39_v0 = vld [vmem:[%s724_s4] sm:$0xff]  ;;  %v40_v1 = vld [vmem:[%s724_s4 + $0x8] sm:$0xff]  ;;  %v41_v2 = vld [vmem:[%s724_s4 + $0x10] sm:$0xff] }
   0x2   :  { %v572_v3 = vpack.c.bf16 %v40_v1, %v39_v0  ;;  %v42_v4 = vld [vmem:[%s724_s4 + $0x18] sm:$0xff]  ;;  %v38_v5 = vld [vmem:[%s725_s3] sm:$0xf]  ;;  %v33_v8 = vld [vmem:[%s726_s0 + $0x8] sm:$0xff] }
   0x3   :  { %v32_v6 = vld [vmem:[%s726_s0] sm:$0xff]  ;;  %v576_v7 = vpack.c.bf16 %v42_v4, %v41_v2  ;;  %546 = vmatprep.subr.msk.mxu1 %vm139_vm0, %v38_v5  ;;  %v35_v10 = vld [vmem:[%s727_s1 + $0x8] sm:$0xff]  ;;  %v46_v13 = vld [vmem:[%s728_s6 + $0x10] sm:$0xff] }
   0x4   :  { %548 = vmatprep.mubr.msk.f32.mxu1 %vm132_vm1, %v32_v6  ;;  %v34_v9 = vld [vmem:[%s727_s1] sm:$0xff]  ;;  %573 = vmatprep.subr.bf16.mxu0 %v572_v3  ;;  %v45_v12 = vld [vmem:[%s728_s6 + $0x8] sm:$0xff]  ;;  %v47_v15 = vld [vmem:[%s728_s6 + $0x18] sm:$0xff] }
   0x5   :  { %547 = vmatpush3.msk.msra.mxu1 %vm139_vm0, %v38_v5  ;;  %575 = vmatpush3.bf16.msra.mxu0 %v572_v3  ;;  %v44_v11 = vld [vmem:[%s728_s6] sm:$0xff]  ;;  %v584_v16 = vpack.c.bf16 %v47_v15, %v46_v13  ;;  %v37_v19 = vld [vmem:[%s730_s2 + $0x8] sm:$0xff] }
   0x6   :  { %543 = vmatprep.mubr.msk.f32.mxu0 %vm50_vm2, %v34_v9  ;;  %577 = vmatprep.subr.bf16.mxu0 %v576_v7  ;;  %v580_v14 = vpack.c.bf16 %v45_v12, %v44_v11  ;;  %v48_v17 = vld [vmem:[%s729_s7] sm:$0xf] }
   0x7   :  { %549 = vmatmul.mubr.msk.f32.vlgmr.msra.gmra.mrb[0].mxu1 %vm132_vm1, %v33_v8  ;;  %v36_v18 = vld [vmem:[%s730_s2] sm:$0xff] }
   0x8   :  { %581 = vmatprep.subr.bf16.mxu1 %v580_v14  ;;  %v504_v22 = vld [vmem:[%s731_s5] ss:$0 sm:$0xff] }
   0x9   :  { %579 = vmatpush3.bf16.msra.mxu0 %v576_v7  ;;  %583 = vmatpush3.bf16.msra.mxu1 %v580_v14  ;;  %v505_v47 = vld [vmem:[%s732_s8] ss:$0 sm:$0xff] }
   0xa   :  { %567 = vmatprep.subr.msk.mxu0 %vm139_vm0, %v38_v5  ;;  %585 = vmatprep.subr.bf16.mxu1 %v584_v16 }
   0xc   :  { %544 = vmatmul.mubr.msk.f32.vlgmr.msra.gmra.mrb[0].mxu0 %vm50_vm2, %v35_v10 }
   0xd   :  { %568 = vmatpush3.msk.msra.mxu0 %vm139_vm0, %v38_v5  ;;  %587 = vmatpush3.bf16.msra.mxu1 %v584_v16 }
   0xe   :  { %562 = vmatprep.subr.msk.mxu1 %vm139_vm0, %v48_v17  ;;  %569 = vmatprep.mubr.msk.f32.mxu0 %vm132_vm1, %v36_v18 }
  0x10   :  { %570 = vmatmul.mubr.msk.f32.vlgmr.msra.gmra.mrb[2].mxu0 %vm132_vm1, %v37_v19 }
  0xda   :  { %v550_v20 = vpop.f32.mrb[0].mxu1 }
  0xdb   :  { %v209_v21 = vpop.f32.mrb[1].mxu1 }
  0xdf   :  { %v545_v23 = vpop.f32.mrb[0].mxu0 }
  0xe0   :  { %v215_v24 = vadd.f32 %v550_v20, %v545_v23  ;;  %v123_v25 = vpop.f32.mrb[1].mxu0 }
  0xe1   :  { %v210_v26 = vadd.f32 %v209_v21, %v123_v25 }
  0xe2   :  { %v225_v27 = vadd.f32 %v504_v22, %v215_v24 }
  0xe3   :  { %v224_v28 = vadd.f32 %v504_v22, %v210_v26  ;;  %v571_v31 = vpop.f32.mrb[2].mxu0 }
  0xe4   :  { %v471_v32 = vpop.f32.mrb[3].mxu0 }
  0xe5   :  { %590 = vtanh.f32 %v224_v28 }
  0xe6   :  { %592 = vtanh.f32 %v225_v27 }
  0xef   :  { %v591_v29 = vpop.eup %590 }
  0xf0   :  { %v593_v30 = vpop.eup %592  ;;  %559 = vmatprep.mubr.msk.f32.mxu1 %vm50_vm2, %v591_v29  ;;  %v399_v35 = vmul.f32 %v591_v29, %v591_v29 }
  0xf1   :  { %560 = vmatmul.mubr.msk.f32.vlgmr.msra.gmra.mrb[2].mxu1 %vm50_vm2, %v593_v30  ;;  %v400_v33 = vmul.f32 %v593_v30, %v593_v30 }
  0xf2   :  { %563 = vmatpush3.msk.msra.mxu1 %vm139_vm0, %v48_v17  ;;  %564 = vmatprep.mubr.msk.f32.mxu1 %vm132_vm1, %v36_v18  ;;  %v401_v39 = vsub.f32 1.0, %v399_v35 }
  0xf3   :  { %v402_v37 = vsub.f32 1.0, %v400_v33 }
  0xf5   :  { %565 = vmatmul.mubr.msk.f32.vlgmr.msra.gmra.mrb[4].mxu1 %vm132_vm1, %v37_v19 }
 0x1c4   :  { %v561_v34 = vpop.f32.mrb[2].mxu1 }
 0x1c5   :  { %v306_v36 = vpop.f32.mrb[3].mxu1  ;;  %v312_v53 = vadd.f32 %v561_v34, %v505_v47 }
 0x1c6   :  { %v307_v49 = vadd.f32 %v505_v47, %v306_v36 }
 0x1c8   :  { %v566_v38 = vpop.f32.mrb[4].mxu1 }
 0x1c9   :  { %v404_v40 = vmul.f32 %v566_v38, %v402_v37  ;;  %v390_v41 = vpop.f32.mrb[5].mxu1 }
 0x1ca   :  { %v403_v42 = vmul.f32 %v401_v39, %v390_v41 }
 0x1cb   :  { %v481_v43 = vmul.f32 %v571_v31, %v404_v40 }
 0x1cc   :  { %v480_v44 = vmul.f32 %v471_v32, %v403_v42 }
 0x1cd   :  { %v485_v46 = vsel %vm50_vm2, %v481_v43, 0.0 }
 0x1ce   :  { %v482_v45 = vsel %vm50_vm2, %v480_v44, 0.0 }
 0x1cf   :  { %483 = vadd.xlane.f32.xlu0 %v482_v45 }
 0x1d3   :  { %486 = vadd.xlane.f32.xlu0 %v485_v46 }
 0x25c   :  { %v484_v48 = vpop.xlane.xlu0 %483 }
 0x25d   :  { %v488_v50 = vsub.f32 0.0, %v484_v48 }
 0x25f   :  { %v490_v51 = vsel %vm132_vm1, %v307_v49, %v488_v50 }
 0x260   :  { %493 = vst.msk [vmem:[%s733_s9] sm:$0xff] %vm492_vm3, %v490_v51  ;;  %v487_v52 = vpop.xlane.xlu0 %486 }
 0x261   :  { %v489_v54 = vsub.f32 0.0, %v487_v52 }
 0x263   :  { %v491_v55 = vsel %vm132_vm1, %v312_v53, %v489_v54 }
 0x264   :  { %494 = vst.msk [vmem:[%s733_s9 + $0x8] sm:$0xff] %vm492_vm3, %v491_v55 }

</bundles_post_ra>
